<compile_context>
chip_gen: v7x
topology: tpu7x:2x2x1
jax: 0.10.0
libtpu: 0.0.40
codegen_flags: <defaults>
</compile_context>

<pallas_src>
import math

import jax
import jax.numpy as jnp
from jax import lax
from jax.experimental import pallas as pl
from jax.experimental.pallas import tpu as pltpu


def _sublane_granule(dtype):
    # 8 rows for 4-byte dtypes, 16 for bf16, 32 for 1-byte dtypes.
    return max(8, 8 * 4 // jnp.dtype(dtype).itemsize)


def _pick_block(dim, target, granule, prefer_multi=False):
    """Largest granule-aligned divisor of `dim` that is <= target.

    With prefer_multi=True the block is also capped at dim // 2 (when possible)
    so a "parallel" grid axis has >= 2 blocks (v7x has 2 TensorCores).  Falls
    back to the full extent (always a legal block) if no such divisor exists.
    """
    cap = min(target, dim)
    if prefer_multi and dim >= 2 * granule:
        cap = min(cap, dim // 2)
    b = (cap // granule) * granule
    while b >= granule:
        if dim % b == 0:
            return b
        b -= granule
    return dim


# ----------------------------------------------------------------------------
# Phase 1: streaming first-occurrence argmax along in_features.
# ----------------------------------------------------------------------------
def _argmax_kernel(w_ref, ii_ref, max_sc, arg_sc):
    # w_ref : (bo, bk) weight tile, native dtype
    # ii_ref: (bo, 1)  int32 output block (resident across the ki axis)
    # max_sc/arg_sc: (bo, 1) running max / running argmax scratch
    k = pl.program_id(1)

    @pl.when(k == 0)
    def _init():
        max_sc[...] = jnp.full(max_sc.shape, -jnp.inf, dtype=max_sc.dtype)
        arg_sc[...] = jnp.zeros(arg_sc.shape, dtype=arg_sc.dtype)

    w = w_ref[...]                                            # native dtype
    bk = w.shape[1]
    blk_max = jnp.max(w, axis=1, keepdims=True)               # (bo, 1)
    cols = lax.broadcasted_iota(jnp.int32, w.shape, 1)        # (bo, bk)
    # First-occurrence argmax inside this K block, shifted to global columns.
    blk_arg = jnp.min(jnp.where(w == blk_max, cols, jnp.int32(bk)),
                      axis=1, keepdims=True) + k * bk         # (bo, 1)

    # Strict '>' keeps the earlier (smaller-index) block on ties, so the global
    # tie-break stays first-occurrence, matching torch.max(dim=1)/jnp.argmax.
    take_new = blk_max > max_sc[...]
    arg_sc[...] = jnp.where(take_new, blk_arg, arg_sc[...])
    max_sc[...] = jnp.where(take_new, blk_max, max_sc[...])

    @pl.when(k == pl.num_programs(1) - 1)
    def _finalize():
        ii_ref[...] = arg_sc[...]


def _argmax_rows(weight, *, block_out=None, block_k=None):
    """weight: (out_f, in_f) -> ii: (out_f, 1) int32, ii[j] = argmax_k weight[j, k]."""
    out_f, in_f = weight.shape
    w_dt = jnp.dtype(weight.dtype)

    bo = block_out if block_out is not None else _pick_block(
        out_f, 256, _sublane_granule(w_dt), prefer_multi=True)
    bk = block_k if block_k is not None else _pick_block(in_f, 2048, 128)
    assert out_f % bo == 0 and in_f % bk == 0, "block sizes must divide the dims"

    # VMEM estimate (lane-padded (bo,1) blocks occupy 128 lanes).
    lane_pad = 128
    est = (2 * bo * bk * w_dt.itemsize                 # weight tile, double-buffered
           + 2 * bo * lane_pad * 4                     # ii output block
           + bo * lane_pad * (w_dt.itemsize + 4))      # scratch
    assert est <= 24 * 1024 * 1024, "argmax tile too large; shrink block_out/block_k"
    vmem_limit = int(min(max(2 * est + (2 << 20), 8 << 20), 48 << 20))

    grid = (out_f // bo, in_f // bk)
    return pl.pallas_call(
        _argmax_kernel,
        out_shape=jax.ShapeDtypeStruct((out_f, 1), jnp.int32),
        grid=grid,
        in_specs=[pl.BlockSpec((bo, bk), lambda oi, ki: (oi, ki))],
        out_specs=pl.BlockSpec((bo, 1), lambda oi, ki: (oi, 0)),
        scratch_shapes=[pltpu.VMEM((bo, 1), weight.dtype),
                        pltpu.VMEM((bo, 1), jnp.int32)],
        compiler_params=pltpu.CompilerParams(
            # ki carries the running-max scratch -> must be "arbitrary";
            # oi blocks are independent -> "parallel" (megacore on v7x).
            dimension_semantics=("parallel", "arbitrary"),
            vmem_limit_bytes=vmem_limit),
    )(weight)


# ----------------------------------------------------------------------------
# Phase 2: row gather out[j, :] = x[ii[j], :] via scalar prefetch + manual DMA.
# ----------------------------------------------------------------------------
def _gather_kernel(ii_ref, x_hbm, o_ref, buf, sem):
    # ii_ref: (out_f,) int32 in SMEM (scalar prefetch)
    # x_hbm : (in_f, M) raw HBM ref (memory_space=pl.ANY)
    # o_ref : (br, M) output block in VMEM
    # buf   : (br, M) VMEM gather staging buffer
    rows = o_ref.shape[0]
    base = pl.program_id(0) * rows

    def _issue(i, c):
        r = ii_ref[base + i]
        pltpu.make_async_copy(x_hbm.at[pl.ds(r, 1), :],
                              buf.at[pl.ds(i, 1), :],
                              sem.at[0]).start()
        return c

    lax.fori_loop(0, rows, _issue, 0)

    def _drain(i, c):
        # Same-sized copies on one semaphore: wait once per issued row copy.
        pltpu.make_async_copy(x_hbm.at[pl.ds(0, 1), :],
                              buf.at[pl.ds(i, 1), :],
                              sem.at[0]).wait()
        return c

    lax.fori_loop(0, rows, _drain, 0)

    o_ref[...] = buf[...]


def _gather_rows(x, ii, out_f, *, block_rows=None):
    """x: (in_f, M), ii: (out_f,) int32 -> (out_f, M) with out[j] = x[ii[j]]."""
    in_f, m = x.shape
    x_dt = jnp.dtype(x.dtype)

    br = block_rows if block_rows is not None else _pick_block(
        out_f, 128, _sublane_granule(x_dt), prefer_multi=True)
    assert out_f % br == 0, "block_rows must divide out_features"

    pad_m = -(-m // 128) * 128
    est = 3 * br * pad_m * x_dt.itemsize       # double-buffered out block + gather buf
    assert est <= 24 * 1024 * 1024, "gather tile too large; shrink block_rows"
    vmem_limit = int(min(max(2 * est + (2 << 20), 8 << 20), 48 << 20))

    grid_spec = pltpu.PrefetchScalarGridSpec(
        num_scalar_prefetch=1,
        grid=(out_f // br,),
        in_specs=[pl.BlockSpec(memory_space=pl.ANY)],      # x stays in HBM
        out_specs=pl.BlockSpec((br, m), lambda j, ii_ref: (j, 0)),
        scratch_shapes=[pltpu.VMEM((br, m), x.dtype),
                        pltpu.SemaphoreType.DMA((1,))],
    )
    return pl.pallas_call(
        _gather_kernel,
        out_shape=jax.ShapeDtypeStruct((out_f, m), x.dtype),
        grid_spec=grid_spec,
        compiler_params=pltpu.CompilerParams(
            dimension_semantics=("parallel",),
            vmem_limit_bytes=vmem_limit),
    )(ii, x)


# ----------------------------------------------------------------------------
# Public wrapper: full forward pass.
# ----------------------------------------------------------------------------
def partition_linear_col(weight, x, *, block_out=None, block_k=None, block_rows=None):
    """weight: (out_f, in_f); x: (in_f, M) -> (out_f, M), out[j] = x[argmax(weight[j])]."""
    out_f, in_f = weight.shape
    n, m = x.shape
    assert n == in_f, "forward requires input.shape[0] == in_features"
    # The original forward's bb[rows, ii] = 1 fancy indexing only broadcasts for
    # a square weight; enforce it instead of silently diverging.
    assert out_f == in_f, "Partition_Linear_col requires out_features == in_features"

    ii2d = _argmax_rows(weight, block_out=block_out, block_k=block_k)   # (out_f, 1) i32
    ii = ii2d.reshape(out_f)    # 1-D so the SMEM prefetch copy stays ~4*out_f bytes
    return _gather_rows(x, ii, out_f, block_rows=block_rows)


def _reference(weight, x):
    ii = jnp.argmax(weight, axis=1)            # first-occurrence tie-break
    return jnp.take(x, ii, axis=0)             # out[j, :] = x[ii[j], :]


if __name__ == "__main__":
    key = jax.random.PRNGKey(0)

    # ---- Case 1: f32, 128x128 weight, M=8 ----------------------------------
    in_features = out_features = 128
    M = 8
    k_w, k_x, key = jax.random.split(key, 3)
    stdv = 1.0 / math.sqrt(in_features)        # mirrors reset_parameters()
    weight = jax.random.uniform(
        k_w, (out_features, in_features), minval=-stdv, maxval=stdv, dtype=jnp.float32)
    x = jax.random.normal(k_x, (in_features, M), dtype=jnp.float32)

    out = jax.block_until_ready(partition_linear_col(weight, x))
    ref = _reference(weight, x)
    assert out.shape == (out_features, M) and out.dtype == x.dtype
    assert jnp.array_equal(out, ref), "case 1 mismatch vs reference"

    # ---- Case 2: bf16 activations, 256x256 weight, multi-block grids --------
    in_features2 = out_features2 = 256
    M2 = 32
    k_w2, k_x2, key = jax.random.split(key, 3)
    stdv2 = 1.0 / math.sqrt(in_features2)
    weight2 = jax.random.uniform(
        k_w2, (out_features2, in_features2), minval=-stdv2, maxval=stdv2,
        dtype=jnp.float32)
    x2 = jax.random.normal(k_x2, (in_features2, M2), dtype=jnp.bfloat16)

    out2 = jax.block_until_ready(
        partition_linear_col(weight2, x2, block_out=128, block_k=128, block_rows=128))
    ref2 = _reference(weight2, x2)
    assert out2.shape == (out_features2, M2) and out2.dtype == jnp.bfloat16
    assert jnp.array_equal(out2, ref2), "case 2 mismatch vs reference"

    print("KERNEL_OK")
</pallas_src>

<mosaic_0001>
module attributes {stable_mosaic.version = 11 : i64} {
  func.func @_argmax_kernel(%arg0: i32, %arg1: i32, %arg2: memref<64x128xf32, #tpu.memory_space<vmem>>, %arg3: memref<64x1xi32, #tpu.memory_space<vmem>>, %arg4: memref<64x1xf32, #tpu.memory_space<vmem>>, %arg5: memref<64x1xi32, #tpu.memory_space<vmem>>) attributes {dimension_semantics = [#tpu.dimension_semantics<parallel>, #tpu.dimension_semantics<arbitrary>], iteration_bounds = array<i64: 2, 1>, scalar_prefetch = 0 : i64, scratch_operands = 2 : i64, tpu.core_type = #tpu.core_type<tc>, window_params = [{transform_indices = @transform_0, window_bounds = array<i64: 64, 128>}, {transform_indices = @transform_1, window_bounds = array<i64: 64, 1>}]} {
    %c0_i32 = arith.constant 0 : i32
    %0 = arith.cmpi eq, %arg1, %c0_i32 : i32
    %1 = arith.extui %0 : i1 to i32
    %c0_i32_0 = arith.constant 0 : i32
    %2 = arith.cmpi ne, %1, %c0_i32_0 : i32
    scf.if %2 {
      %cst_16 = arith.constant 0xFF800000 : f32
      %27 = vector.broadcast %cst_16 : f32 to vector<64x1xf32>
      %c0_17 = arith.constant 0 : index
      %c0_18 = arith.constant 0 : index
      %28 = vector.load %arg4[%c0_17, %c0_18] : memref<64x1xf32, #tpu.memory_space<vmem>>, vector<64x1xf32>
      tpu.vector_store %arg4[%c0_17, %c0_18], %27 {strides = array<i32>} : memref<64x1xf32, #tpu.memory_space<vmem>>, vector<64x1xf32>,
      %c0_i32_19 = arith.constant 0 : i32
      %29 = vector.broadcast %c0_i32_19 : i32 to vector<64x1xi32>
      %c0_20 = arith.constant 0 : index
      %c0_21 = arith.constant 0 : index
      %30 = vector.load %arg5[%c0_20, %c0_21] : memref<64x1xi32, #tpu.memory_space<vmem>>, vector<64x1xi32>
      tpu.vector_store %arg5[%c0_20, %c0_21], %29 {strides = array<i32>} : memref<64x1xi32, #tpu.memory_space<vmem>>, vector<64x1xi32>,
    } else {
    }
    %c0 = arith.constant 0 : index
    %c0_1 = arith.constant 0 : index
    %3 = vector.load %arg2[%c0, %c0_1] : memref<64x128xf32, #tpu.memory_space<vmem>>, vector<64x128xf32>
    %cst = arith.constant dense<0xFF800000> : vector<64xf32>
    %4 = vector.multi_reduction <maximumf>, %3, %cst [1] : vector<64x128xf32> to vector<64xf32>
    %5 = vector.shape_cast %4 : vector<64xf32> to vector<64x1xf32>
    %6 = tpu.iota {dimensions = array<i32: 1>} : vector<64x128xi32>
    %7 = vector.broadcast %5 : vector<64x1xf32> to vector<64x128xf32>
    %8 = arith.cmpf oeq, %3, %7 : vector<64x128xf32>
    %c128_i32 = arith.constant 128 : i32
    %9 = vector.broadcast %c128_i32 : i32 to vector<64x128xi32>
    %10 = arith.select %8, %6, %9 : vector<64x128xi1>, vector<64x128xi32>
    %cst_2 = arith.constant dense<2147483647> : vector<64xi32>
    %11 = vector.multi_reduction <minsi>, %10, %cst_2 [1] : vector<64x128xi32> to vector<64xi32>
    %12 = vector.shape_cast %11 : vector<64xi32> to vector<64x1xi32>
    %c128_i32_3 = arith.constant 128 : i32
    %13 = arith.muli %arg1, %c128_i32_3 : i32
    %14 = vector.broadcast %13 : i32 to vector<64x1xi32>
    %15 = arith.addi %12, %14 : vector<64x1xi32>
    %c0_4 = arith.constant 0 : index
    %c0_5 = arith.constant 0 : index
    %16 = vector.load %arg4[%c0_4, %c0_5] : memref<64x1xf32, #tpu.memory_space<vmem>>, vector<64x1xf32>
    %17 = arith.cmpf ogt, %5, %16 : vector<64x1xf32>
    %c0_6 = arith.constant 0 : index
    %c0_7 = arith.constant 0 : index
    %18 = vector.load %arg5[%c0_6, %c0_7] : memref<64x1xi32, #tpu.memory_space<vmem>>, vector<64x1xi32>
    %19 = arith.select %17, %15, %18 : vector<64x1xi1>, vector<64x1xi32>
    %c0_8 = arith.constant 0 : index
    %c0_9 = arith.constant 0 : index
    %20 = vector.load %arg5[%c0_8, %c0_9] : memref<64x1xi32, #tpu.memory_space<vmem>>, vector<64x1xi32>
    tpu.vector_store %arg5[%c0_8, %c0_9], %19 {strides = array<i32>} : memref<64x1xi32, #tpu.memory_space<vmem>>, vector<64x1xi32>,
    %c0_10 = arith.constant 0 : index
    %c0_11 = arith.constant 0 : index
    %21 = vector.load %arg4[%c0_10, %c0_11] : memref<64x1xf32, #tpu.memory_space<vmem>>, vector<64x1xf32>
    %22 = arith.select %17, %5, %21 : vector<64x1xi1>, vector<64x1xf32>
    %c0_12 = arith.constant 0 : index
    %c0_13 = arith.constant 0 : index
    %23 = vector.load %arg4[%c0_12, %c0_13] : memref<64x1xf32, #tpu.memory_space<vmem>>, vector<64x1xf32>
    tpu.vector_store %arg4[%c0_12, %c0_13], %22 {strides = array<i32>} : memref<64x1xf32, #tpu.memory_space<vmem>>, vector<64x1xf32>,
    %c0_i32_14 = arith.constant 0 : i32
    %24 = arith.cmpi eq, %arg1, %c0_i32_14 : i32
    %25 = arith.extui %24 : i1 to i32
    %c0_i32_15 = arith.constant 0 : i32
    %26 = arith.cmpi ne, %25, %c0_i32_15 : i32
    scf.if %26 {
      %c0_16 = arith.constant 0 : index
      %c0_17 = arith.constant 0 : index
      %27 = vector.load %arg5[%c0_16, %c0_17] : memref<64x1xi32, #tpu.memory_space<vmem>>, vector<64x1xi32>
      %c0_18 = arith.constant 0 : index
      %c0_19 = arith.constant 0 : index
      %28 = vector.load %arg3[%c0_18, %c0_19] : memref<64x1xi32, #tpu.memory_space<vmem>>, vector<64x1xi32>
      tpu.vector_store %arg3[%c0_18, %c0_19], %27 {strides = array<i32>} : memref<64x1xi32, #tpu.memory_space<vmem>>, vector<64x1xi32>,
    } else {
    }
    return
  }
  func.func @transform_0(%arg0: i32, %arg1: i32) -> (i32, i32) {
    %c0_i32 = arith.constant 0 : i32
    return %arg0, %arg1 : i32, i32
  }
  func.func @transform_1(%arg0: i32, %arg1: i32) -> (i32, i32) {
    %c0_i32 = arith.constant 0 : i32
    %c0_i32_0 = arith.constant 0 : i32
    return %arg0, %c0_i32 : i32, i32
  }
}

</mosaic_0001>

<bundles_post_ra>
// kernel: tpu_custom_call.1
= control target key start
LH: loop header
LB: loop body
LE: loop exit
PB: predicated region body
PF: predicated region fallthrough
CT: control target
= control target key end

     0   :  { %6 = vsyncpa [#allocation5], 0  ;;  %s1018_s0 = inlined_call_operand.hbm [shape: f32[128,128], index: 0, kind: input, shape index: {}]   ;;  %s1019_s1 = inlined_call_operand.vmem [shape: s32[128,1], index: 1, kind: output, shape index: {}]  }
   0x1   :  { %8 = vsyncpa [#allocation5 + $0x1], 0  ;;  %s671_s6 = smov 0   ;;  %s673_s7 = smov 0  }
   0x2   :  { %s675_s8 = smov 0   ;;  %s677_s9 = smov 0  }
   0x3   :  { %s679_s10 = smov 0   ;;  %s681_s11 = smov 0  }
   0x4 LB: > { %s501_s12 = sadd.s32 4294967295, %s654_s11   ;;  %s26_s13 = sadd.s32 1, %s650_s10  ;;  %s654_s11 = sphi %s681_s11, %s14_s11   ;;  %s650_s10 = sphi %s679_s10, %s1027_s10   ;;  %s646_s9 = sphi %s677_s9, %s1026_s9   ;;  %s642_s8 = sphi %s675_s8, %s1025_s8   ;;  %s638_s7 = sphi %s673_s7, %s1024_s7   ;;  %s634_s6 = sphi %s671_s6, %s1023_s6  }
   0x5   : > { %p28_p0 = scmp.ge.s32.totalorder %s26_s13, 2  ;;  %s35_s14 = sadd.s32 1, %s642_s8 }
   0x6   : > { %p42_p1 = scmp.ne.s32.totalorder %s642_s8, %s638_s7  ;;  %p43_p2 = scmp.eq.s32.totalorder %s654_s11, 0 }
   0x7   : > { %s1029_s13 = smov (%p28_p0, %s26_s13), 0  ;;  %p48_p4 = scmp.ne.s32.totalorder %s638_s7, %s634_s6 }
   0x8   : > { %p707_p3 = por %p43_p2, %p42_p1  ;;  %s30_s16 = ssub.s32 %s650_s10, %s1029_s13 }
   0x9   : > { %p49_p5 = scmp.eq.s32.totalorder %s501_s12, 0  ;;  %p33_p6 = scmp.eq.s32.totalorder %s30_s16, 0 }
   0xa   : > { %p521_p8 = scmp.lt.s32.totalorder %s654_s11, 2  ;;  %s98_s19 = sand.u32 1, %s642_s8  }
   0xb   : > { %p714_p7 = por %p49_p5, %p48_p4  ;;  %s514_s20 = sshll.u32 %s650_s10, 10 }
   0xc   : > { %s720_s18 = scalar_select %p33_p6, %s642_s8, %s35_s14  }
   0xd   : > { %s505_s21 = sshll.u32 %s98_s19, 6  ;;  %s727_s24 = scalar_lea.hbm %s1018_s0, %s514_s20 }
   0xe   : > { %s102_s25 = scalar_lea.vmem [#allocation4], %s505_s21  ;;  %p731_p9 = pnand %p521_p8, %p707_p3 }
   0xf   : > { %s110_s26 = sshll.u32 %s102_s25, 4  ;;  %s737_s28 = scalar_lea.sflag [#allocation5], %s98_s19  ;;  %s735_s26 = int_to_ptr.vmem [resolvable:$true] %s110_s26 }
  0x10   : > { %s574_s29 = scalar_lea.hbm %s727_s24, 1024  ;;  %p576_p11 = pneg %p731_p9 }
  0x11   : > { %p575_p10 = scmp.ne.s32.totalorder %s727_s24, %s574_s29  ;;  %s579_s3 = scalar_lea.hbm %s1018_s0, 2048 }
  0x12   : > { %p580_p0 = scmp.lt.u32.totalorder %s727_s24, %s1018_s0  ;;  %p581_p1 = scmp.lt.u32.totalorder %s579_s3, %s574_s29 }
  0x13   : > { %p577_p12 = pnand %p576_p11, %p575_p10  ;;  %p583_p3 = scmp.lt.u32.totalorder %s574_s29, %s727_s24 }
  0x14   : > { %p582_p2 = por %p581_p1, %p580_p0 }
  0x15   : > { %p578_p13 = pneg %p577_p12 }
  0x16   : > { %p584_p4 = por %p583_p3, %p582_p2 }
  0x18   : > { %p585_p5 = pnand %p584_p4, %p578_p13 }
  0x1a   : > { %588 = shalt.err (!%p585_p5)
}
  0x1b   : > { %s589_s6 = scalar_lea.vmem %s735_s26, 1024  ;;  %s656_s12 = smov [#allocation4]  }
  0x1c   : > { %p590_p6 = scmp.ne.s32.totalorder %s735_s26, %s589_s6  ;;  %s594_s14 = sshll.u32 %s656_s12, 4  ;;  %s595_s14 = int_to_ptr.vmem [resolvable:$false] %s594_s14 }
  0x1d   : > { %s596_s15 = scalar_lea.vmem %s595_s14, 2048  ;;  %p597_p12 = scmp.lt.s32.totalorder %s735_s26, %s595_s14 }
  0x1e   : > { %p592_p8 = pnand %p590_p6, %p576_p11  ;;  %p598_p0 = scmp.lt.s32.totalorder %s596_s15, %s589_s6 }
  0x20   : > { %p593_p10 = pneg %p592_p8  ;;  %p599_p1 = por %p598_p0, %p597_p12 }
  0x22   : > { %p600_p2 = pnand %p599_p1, %p593_p10 }
  0x24   : > { %603 = shalt.err (!%p600_p2)
}
  0x25   : > { %s657_s16 = smov 128   ;;  %s658_s19 = smov 8  }
  0x26   : > { %520 = dma.hbm_to_vmem [thread:$0]  (!%p731_p9), %s727_s24, 1024, %s735_s26, %s737_s28, %s657_s16, %s657_s16, %s658_s19  }
  0x27   : > { %p508_p11 = scmp.ge.s32.totalorder %s654_s11, 1  ;;  %p118_p13 = scmp.lt.s32.totalorder %s654_s11, 3 }
  0x29   : > { %p119_p3 = pnand %p508_p11, %p118_p13 }
  0x2a   : > { %s124_s20 = sand.u32 (!%p119_p3), 1, %s638_s7  }
  0x2b   : > { %122 = sbr.rel (%p119_p3) target bundleno = 517 (0x205), region = 24  ;;  %s509_s21 = sshll.u32 (!%p119_p3), %s124_s20, 6 }
  0x2c   : > { %s125_s22 = scalar_lea.sflag (!%p119_p3), [#allocation5], %s124_s20  ;;  %s128_s23 = scalar_lea.vmem (!%p119_p3), [#allocation4], %s509_s21 }
  0x32   : > { %629 = dma.done.wait (%p714_p7), %s125_s22, 1024  }
  0x33   : > { %631 = vsyncadd (%p714_p7), %s125_s22, 4294966272  ;;  %vm158_vm0 = vcmask 7168   ;;  %v659_v0 = vmov -inf   ;;  %v175_v1 = vld [vmem:[%s128_s23] sm:$0xff]  ;;  %v177_v2 = vld [vmem:[%s128_s23 + $0x10] sm:$0xff]  ;;  %v199_v9 = vlaneseq  ;;  %v660_v59 = vmov 0  }
  0x34   : > { %159 = vst.msk [vmem:[#allocation2] sm:$0xff] %vm158_vm0, %v659_v0  ;;  %160 = vst.msk [vmem:[#allocation2 + $0x8] sm:$0xff] %vm158_vm0, %v659_v0  ;;  %183 = vmax.xlane.f32.xlu0 %v175_v1  ;;  %187 = vmax.xlane.f32.xlu1 %v177_v2  ;;  %v176_v3 = vld [vmem:[%s128_s23 + $0x8] sm:$0xff]  ;;  %v178_v4 = vld [vmem:[%s128_s23 + $0x18] sm:$0xff]  ;;  %s510_s17 = sshll.u32 %s646_s9, 3 }
  0x35   : > { %161 = vst.msk [vmem:[#allocation2 + $0x10] sm:$0xff] %vm158_vm0, %v659_v0  ;;  %162 = vst.msk [vmem:[#allocation2 + $0x18] sm:$0xff] %vm158_vm0, %v659_v0  ;;  %v179_v5 = vld [vmem:[%s128_s23 + $0x20] sm:$0xff]  ;;  %v180_v6 = vld [vmem:[%s128_s23 + $0x28] sm:$0xff]  ;;  %v790_v12 = vand.u32 127, %v199_v9  ;;  %p149_p7 = scmp.lt.s32.totalorder %s510_s17, 15 }
  0x36   : > { %163 = vst.msk [vmem:[#allocation2 + $0x20] sm:$0xff] %vm158_vm0, %v659_v0  ;;  %164 = vst.msk [vmem:[#allocation2 + $0x28] sm:$0xff] %vm158_vm0, %v659_v0  ;;  %v780_v7 = vld [vmem:[%s128_s23 + $0x30] sm:$0xff]  ;;  %v782_v8 = vld [vmem:[%s128_s23 + $0x38] sm:$0xff] }
  0x37   : > { %165 = vst.msk [vmem:[#allocation2 + $0x30] sm:$0xff] %vm158_vm0, %v659_v0  ;;  %166 = vst.msk [vmem:[#allocation2 + $0x38] sm:$0xff] %vm158_vm0, %v659_v0  ;;  %s1031_s17 = smov (!%p149_p7, %s510_s17), 15 }
  0x38   : > { %185 = vmax.xlane.f32.xlu0 %v176_v3  ;;  %189 = vmax.xlane.f32.xlu1 %v178_v4  ;;  %167 = vst.msk [vmem:[#allocation3] sm:$0xff] %vm158_vm0, %v660_v59  ;;  %168 = vst.msk [vmem:[#allocation3 + $0x8] sm:$0xff] %vm158_vm0, %v660_v59  ;;  %s511_s9 = sshll.u32 %s1031_s17, 3 }
  0x39   : > { %169 = vst.msk [vmem:[#allocation3 + $0x10] sm:$0xff] %vm158_vm0, %v660_v59  ;;  %170 = vst.msk [vmem:[#allocation3 + $0x18] sm:$0xff] %vm158_vm0, %v660_v59  ;;  %s961_s26 = scalar_lea.vmem %s1019_s1, %s511_s9 }
  0x3a   : > { %171 = vst.msk [vmem:[#allocation3 + $0x20] sm:$0xff] %vm158_vm0, %v660_v59  ;;  %172 = vst.msk [vmem:[#allocation3 + $0x28] sm:$0xff] %vm158_vm0, %v660_v59 }
  0x3b   : > { %v786_v10 = vld [vmem:[#allocation2] sm:$0xff]  ;;  %v812_v17 = vld [vmem:[#allocation2 + $0x8] sm:$0xff]  ;;  %173 = vst.msk [vmem:[#allocation3 + $0x30] sm:$0xff] %vm158_vm0, %v660_v59  ;;  %174 = vst.msk [vmem:[#allocation3 + $0x38] sm:$0xff] %vm158_vm0, %v660_v59 }
  0x3c   : > { %191 = vmax.xlane.f32.xlu0 %v179_v5  ;;  %193 = vmax.xlane.f32.xlu1 %v180_v6  ;;  %v788_v11 = vld [vmem:[#allocation2 + $0x10] sm:$0xff]  ;;  %v814_v18 = vld [vmem:[#allocation2 + $0x18] sm:$0xff] }
  0x3d   : > { %v848_v28 = vld [vmem:[#allocation2 + $0x20] sm:$0xff]  ;;  %v850_v29 = vld [vmem:[#allocation2 + $0x28] sm:$0xff] }
  0x3e   : > { %v885_v40 = vld [vmem:[#allocation2 + $0x30] sm:$0xff]  ;;  %v887_v41 = vld [vmem:[#allocation2 + $0x38] sm:$0xff] }
  0x40   : > { %195 = vmax.xlane.f32.xlu0 %v780_v7  ;;  %197 = vmax.xlane.f32.xlu1 %v782_v8 }
  0xc1   : > { %v792_v13 = vpop.xlane.xlu0 %183  ;;  %v794_v14 = vpop.xlane.xlu1 %187 }
  0xc2   : > { %vm201_vm1 = vcmp.eq.f32.partialorder %v175_v1, %v792_v13  ;;  %vm347_vm2 = vcmp.gt.f32.partialorder %v792_v13, %v786_v10  ;;  %vm203_vm3 = vcmp.eq.f32.partialorder %v177_v2, %v794_v14  ;;  %vm349_vm4 = vcmp.gt.f32.partialorder %v794_v14, %v788_v11 }
  0xc3   : > { %v388_v15 = vsel %vm347_vm2, %v792_v13, %v786_v10  ;;  %v390_v16 = vsel %vm349_vm4, %v794_v14, %v788_v11  ;;  %v817_v19 = vsel %vm201_vm1, %v790_v12, 128  ;;  %v820_v20 = vsel %vm203_vm3, %v790_v12, 128 }
  0xc4   : > { %396 = vst.msk [vmem:[#allocation2] sm:$0xff] %vm158_vm0, %v388_v15  ;;  %398 = vst.msk [vmem:[#allocation2 + $0x10] sm:$0xff] %vm158_vm0, %v390_v16  ;;  %v218_v21 = vshra.s32 %v817_v19, 16  ;;  %v246_v24 = vshra.s32 %v820_v20, 16  ;;  %v217_v60 = vand.u32 65535, %v817_v19  ;;  %v245_v0 = vand.u32 65535, %v820_v20 }
  0xc5   : > { %v825_v22 = vpop.xlane.xlu0 %185  ;;  %v827_v23 = vpop.xlane.xlu1 %189 }
  0xc6   : > { %vm202_vm5 = vcmp.eq.f32.partialorder %v176_v3, %v825_v22  ;;  %vm348_vm6 = vcmp.gt.f32.partialorder %v825_v22, %v812_v17  ;;  %vm204_vm7 = vcmp.eq.f32.partialorder %v178_v4, %v827_v23  ;;  %vm350_vm8 = vcmp.gt.f32.partialorder %v827_v23, %v814_v18 }
  0xc7   : > { %v389_v25 = vsel %vm348_vm6, %v825_v22, %v812_v17  ;;  %v391_v26 = vsel %vm350_vm8, %v827_v23, %v814_v18  ;;  %v846_v27 = vcvt.s32.f32 %v218_v21  ;;  %v855_v30 = vsel %vm202_vm5, %v790_v12, 128 }
  0xc8   : > { %397 = vst.msk [vmem:[#allocation2 + $0x8] sm:$0xff] %vm158_vm0, %v389_v25  ;;  %399 = vst.msk [vmem:[#allocation2 + $0x18] sm:$0xff] %vm158_vm0, %v391_v26  ;;  %v858_v31 = vsel %vm204_vm7, %v790_v12, 128  ;;  %v865_v34 = vcvt.s32.f32 %v246_v24  ;;  %v232_v35 = vshra.s32 %v855_v30, 16  ;;  %v219_v62 = vcvt.s32.f32 %v217_v60 }
  0xc9   : > { %221 = vmin.xlane.f32.xlu0 %v846_v27  ;;  %v861_v32 = vpop.xlane.xlu0 %191  ;;  %v863_v33 = vpop.xlane.xlu1 %193  ;;  %v260_v36 = vshra.s32 %v858_v31, 16  ;;  %v231_v63 = vand.u32 65535, %v855_v30 }
  0xca   : > { %vm205_vm9 = vcmp.eq.f32.partialorder %v179_v5, %v861_v32  ;;  %vm351_vm10 = vcmp.gt.f32.partialorder %v861_v32, %v848_v28  ;;  %vm206_vm11 = vcmp.eq.f32.partialorder %v180_v6, %v863_v33  ;;  %vm352_vm12 = vcmp.gt.f32.partialorder %v863_v33, %v850_v29 }
  0xcb   : > { %v392_v37 = vsel %vm351_vm10, %v861_v32, %v848_v28  ;;  %v393_v38 = vsel %vm352_vm12, %v863_v33, %v850_v29  ;;  %v234_v39 = vcvt.s32.f32 %v232_v35  ;;  %v213_v42 = vsel %vm205_vm9, %v790_v12, 128 }
  0xcc   : > { %400 = vst.msk [vmem:[#allocation2 + $0x20] sm:$0xff] %vm158_vm0, %v392_v37  ;;  %401 = vst.msk [vmem:[#allocation2 + $0x28] sm:$0xff] %vm158_vm0, %v393_v38  ;;  %v893_v43 = vsel %vm206_vm11, %v790_v12, 128  ;;  %v262_v46 = vcvt.s32.f32 %v260_v36  ;;  %v274_v47 = vshra.s32 %v213_v42, 16  ;;  %v233_v4 = vcvt.s32.f32 %v231_v63 }
  0xcd   : > { %249 = vmin.xlane.f32.xlu0 %v865_v34  ;;  %235 = vmin.xlane.f32.xlu1 %v234_v39  ;;  %v896_v44 = vpop.xlane.xlu0 %195  ;;  %v898_v45 = vpop.xlane.xlu1 %197  ;;  %v288_v48 = vshra.s32 %v893_v43, 16  ;;  %v247_v5 = vcvt.s32.f32 %v245_v0  ;;  %v259_v6 = vand.u32 65535, %v858_v31  ;;  %v287_v20 = vand.u32 65535, %v893_v43 }
  0xce   : > { %vm207_vm13 = vcmp.eq.f32.partialorder %v780_v7, %v896_v44  ;;  %vm353_vm14 = vcmp.gt.f32.partialorder %v896_v44, %v885_v40  ;;  %vm208_vm15 = vcmp.eq.f32.partialorder %v782_v8, %v898_v45  ;;  %vm354_vm1 = vcmp.gt.f32.partialorder %v898_v45, %v887_v41 }
  0xcf   : > { %v394_v49 = vsel %vm353_vm14, %v896_v44, %v885_v40  ;;  %v395_v50 = vsel %vm354_vm1, %v898_v45, %v887_v41  ;;  %v276_v51 = vcvt.s32.f32 %v274_v47  ;;  %v215_v52 = vsel %vm207_vm13, %v790_v12, 128 }
  0xd0   : > { %402 = vst.msk [vmem:[#allocation2 + $0x30] sm:$0xff] %vm158_vm0, %v394_v49  ;;  %403 = vst.msk [vmem:[#allocation2 + $0x38] sm:$0xff] %vm158_vm0, %v395_v50  ;;  %v923_v53 = vsel %vm208_vm15, %v790_v12, 128  ;;  %v290_v54 = vcvt.s32.f32 %v288_v48  ;;  %v302_v55 = vshra.s32 %v215_v52, 16  ;;  %v273_v7 = vand.u32 65535, %v213_v42  ;;  %v355_v50 = vld [vmem:[#allocation3] sm:$0xff] }
  0xd1   : > { %263 = vmin.xlane.f32.xlu1 %v262_v46  ;;  %277 = vmin.xlane.f32.xlu0 %v276_v51  ;;  %v316_v56 = vshra.s32 %v923_v53, 16  ;;  %v261_v16 = vcvt.s32.f32 %v259_v6  ;;  %v301_v21 = vand.u32 65535, %v215_v52  ;;  %v289_v30 = vcvt.s32.f32 %v287_v20 }
  0xd2   : > { %v304_v57 = vcvt.s32.f32 %v302_v55  ;;  %v275_v19 = vcvt.s32.f32 %v273_v7 }
  0xd3   : > { %v318_v58 = vcvt.s32.f32 %v316_v56  ;;  %v303_v31 = vcvt.s32.f32 %v301_v21 }
  0xd5   : > { %291 = vmin.xlane.f32.xlu1 %v290_v54  ;;  %305 = vmin.xlane.f32.xlu0 %v304_v57 }
  0xd9   : > { %319 = vmin.xlane.f32.xlu1 %v318_v58 }
 0x156   : > { %v222_v61 = vpop.xlane.xlu0 %221 }
 0x157   : > { %vm223_vm3 = vcmp.eq.f32.partialorder %v846_v27, %v222_v61  ;;  %v228_v42 = vcvt.f32.s32 %v222_v61  ;;  %v356_v61 = vld [vmem:[#allocation3 + $0x8] sm:$0xff] }
 0x158   : > { %v224_v1 = vsel %vm223_vm3, %v219_v62, inf  ;;  %v357_v62 = vld [vmem:[#allocation3 + $0x10] sm:$0xff] }
 0x159   : > { %225 = vmin.xlane.f32.xlu0 %v224_v1  ;;  %v229_v47 = vshll.u32 %v228_v42, 16 }
 0x15a   : > { %v236_v2 = vpop.xlane.xlu1 %235  ;;  %v250_v3 = vpop.xlane.xlu0 %249 }
 0x15b   : > { %vm237_vm5 = vcmp.eq.f32.partialorder %v234_v39, %v236_v2  ;;  %vm251_vm7 = vcmp.eq.f32.partialorder %v865_v34, %v250_v3  ;;  %v315_v34 = vand.u32 65535, %v923_v53  ;;  %v242_v43 = vcvt.f32.s32 %v236_v2 }
 0x15c   : > { %v238_v8 = vsel %vm237_vm5, %v233_v4, inf  ;;  %v252_v9 = vsel %vm251_vm7, %v247_v5, inf  ;;  %v256_v48 = vcvt.f32.s32 %v250_v3 }
 0x15d   : > { %239 = vmin.xlane.f32.xlu1 %v238_v8  ;;  %253 = vmin.xlane.f32.xlu0 %v252_v9  ;;  %v317_v38 = vcvt.s32.f32 %v315_v34  ;;  %v243_v52 = vshll.u32 %v242_v43, 16  ;;  %v358_v9 = vld [vmem:[#allocation3 + $0x18] sm:$0xff] }
 0x15e   : > { %v264_v12 = vpop.xlane.xlu1 %263  ;;  %v278_v15 = vpop.xlane.xlu0 %277 }
 0x15f   : > { %vm265_vm9 = vcmp.eq.f32.partialorder %v262_v46, %v264_v12  ;;  %vm279_vm11 = vcmp.eq.f32.partialorder %v276_v51, %v278_v15  ;;  %v270_v53 = vcvt.f32.s32 %v264_v12  ;;  %v359_v12 = vld [vmem:[#allocation3 + $0x20] sm:$0xff] }
 0x160   : > { %v266_v24 = vsel %vm265_vm9, %v261_v16, inf  ;;  %v280_v25 = vsel %vm279_vm11, %v275_v19, inf }
 0x161   : > { %267 = vmin.xlane.f32.xlu1 %v266_v24  ;;  %281 = vmin.xlane.f32.xlu0 %v280_v25  ;;  %v271_v1 = vshll.u32 %v270_v53, 16 }
 0x162   : > { %v292_v26 = vpop.xlane.xlu1 %291  ;;  %v306_v27 = vpop.xlane.xlu0 %305 }
 0x163   : > { %vm293_vm13 = vcmp.eq.f32.partialorder %v290_v54, %v292_v26  ;;  %vm307_vm15 = vcmp.eq.f32.partialorder %v304_v57, %v306_v27  ;;  %v284_v54 = vcvt.f32.s32 %v278_v15  ;;  %v257_v57 = vshll.u32 %v256_v48, 16 }
 0x164   : > { %v294_v35 = vsel %vm293_vm13, %v289_v30, inf  ;;  %v308_v36 = vsel %vm307_vm15, %v303_v31, inf  ;;  %v298_v3 = vcvt.f32.s32 %v292_v26  ;;  %v312_v4 = vcvt.f32.s32 %v306_v27  ;;  %v360_v27 = vld [vmem:[#allocation3 + $0x28] sm:$0xff]  ;;  %v361_v30 = vld [vmem:[#allocation3 + $0x30] sm:$0xff] }
 0x165   : > { %295 = vmin.xlane.f32.xlu1 %v294_v35  ;;  %309 = vmin.xlane.f32.xlu0 %v308_v36  ;;  %v285_v2 = vshll.u32 %v284_v54, 16 }
 0x166   : > { %v942_v37 = vpop.xlane.xlu1 %319  ;;  %v299_v15 = vshll.u32 %v298_v3, 16  ;;  %v313_v16 = vshll.u32 %v312_v4, 16 }
 0x167   : > { %vm321_vm3 = vcmp.eq.f32.partialorder %v318_v58, %v942_v37  ;;  %v326_v11 = vcvt.f32.s32 %v942_v37 }
 0x168   : > { %v322_v39 = vsel %vm321_vm3, %v317_v38, inf  ;;  %v362_v38 = vld [vmem:[#allocation3 + $0x38] sm:$0xff] }
 0x169   : > { %323 = vmin.xlane.f32.xlu1 %v322_v39  ;;  %v327_v23 = vshll.u32 %v326_v11, 16 }
 0x1e6   : > { %v226_v46 = vpop.xlane.xlu0 %225 }
 0x1e7   : > { %v227_v49 = vcvt.f32.s32 %v226_v46 }
 0x1e9   : > { %v230_v51 = vadd.s32 %v229_v47, %v227_v49 }
 0x1ea   : > { %v240_v55 = vpop.xlane.xlu1 %239  ;;  %v254_v56 = vpop.xlane.xlu0 %253 }
 0x1eb   : > { %v363_v58 = vsel %vm347_vm2, %v230_v51, %v355_v50  ;;  %v241_v59 = vcvt.f32.s32 %v240_v55  ;;  %v255_v60 = vcvt.f32.s32 %v254_v56 }
 0x1ec   : > { %372 = vst.msk [vmem:[#allocation3] sm:$0xff] %vm158_vm0, %v363_v58 }
 0x1ed   : > { %v244_v63 = vadd.s32 %v243_v52, %v241_v59  ;;  %v258_v0 = vadd.s32 %v257_v57, %v255_v60 }
 0x1ee   : > { %v268_v5 = vpop.xlane.xlu1 %267  ;;  %v282_v6 = vpop.xlane.xlu0 %281 }
 0x1ef   : > { %v364_v10 = vsel %vm348_vm6, %v244_v63, %v356_v61  ;;  %v365_v13 = vsel %vm349_vm4, %v258_v0, %v357_v62  ;;  %v269_v7 = vcvt.f32.s32 %v268_v5  ;;  %v283_v8 = vcvt.f32.s32 %v282_v6 }
 0x1f0   : > { %373 = vst.msk [vmem:[#allocation3 + $0x8] sm:$0xff] %vm158_vm0, %v364_v10  ;;  %374 = vst.msk [vmem:[#allocation3 + $0x10] sm:$0xff] %vm158_vm0, %v365_v13 }
 0x1f1   : > { %v272_v17 = vadd.s32 %v271_v1, %v269_v7  ;;  %v286_v22 = vadd.s32 %v285_v2, %v283_v8 }
 0x1f2   : > { %v296_v14 = vpop.xlane.xlu1 %295  ;;  %v310_v19 = vpop.xlane.xlu0 %309 }
 0x1f3   : > { %v407_v20 = vld [vmem:[#allocation3] sm:$0xff]  ;;  %v366_v21 = vsel %vm350_vm8, %v272_v17, %v358_v9  ;;  %v367_v24 = vsel %vm351_vm10, %v286_v22, %v359_v12  ;;  %v297_v25 = vcvt.f32.s32 %v296_v14  ;;  %v311_v26 = vcvt.f32.s32 %v310_v19 }
 0x1f4   : > { %415 = vst.msk [vmem:[%s961_s26] sm:$0xff] %vm158_vm0, %v407_v20  ;;  %375 = vst.msk [vmem:[#allocation3 + $0x18] sm:$0xff] %vm158_vm0, %v366_v21 }
 0x1f5   : > { %376 = vst.msk [vmem:[#allocation3 + $0x20] sm:$0xff] %vm158_vm0, %v367_v24  ;;  %v300_v31 = vadd.s32 %v299_v15, %v297_v25  ;;  %v314_v34 = vadd.s32 %v313_v16, %v311_v26 }
 0x1f6   : > { %v324_v18 = vpop.xlane.xlu1 %323 }
 0x1f7   : > { %v408_v28 = vld [vmem:[#allocation3 + $0x8] sm:$0xff]  ;;  %v409_v32 = vld [vmem:[#allocation3 + $0x10] sm:$0xff]  ;;  %v368_v35 = vsel %vm352_vm12, %v300_v31, %v360_v27  ;;  %v369_v36 = vsel %vm353_vm14, %v314_v34, %v361_v30  ;;  %v325_v37 = vcvt.f32.s32 %v324_v18 }
 0x1f8   : > { %416 = vst.msk [vmem:[%s961_s26 + $0x8] sm:$0xff] %vm158_vm0, %v408_v28  ;;  %417 = vst.msk [vmem:[%s961_s26 + $0x10] sm:$0xff] %vm158_vm0, %v409_v32 }
 0x1f9   : > { %377 = vst.msk [vmem:[#allocation3 + $0x28] sm:$0xff] %vm158_vm0, %v368_v35  ;;  %378 = vst.msk [vmem:[#allocation3 + $0x30] sm:$0xff] %vm158_vm0, %v369_v36  ;;  %v328_v39 = vadd.s32 %v327_v23, %v325_v37 }
 0x1fb   : > { %v410_v29 = vld [vmem:[#allocation3 + $0x18] sm:$0xff]  ;;  %v370_v40 = vsel %vm354_vm1, %v328_v39, %v362_v38 }
 0x1fc   : > { %v411_v33 = vld [vmem:[#allocation3 + $0x20] sm:$0xff]  ;;  %418 = vst.msk [vmem:[%s961_s26 + $0x18] sm:$0xff] %vm158_vm0, %v410_v29  ;;  %379 = vst.msk [vmem:[#allocation3 + $0x38] sm:$0xff] %vm158_vm0, %v370_v40 }
 0x1fd   : > { %419 = vst.msk [vmem:[%s961_s26 + $0x20] sm:$0xff] %vm158_vm0, %v411_v33 }
 0x200   : > { %v412_v44 = vld [vmem:[#allocation3 + $0x28] sm:$0xff]  ;;  %v413_v42 = vld [vmem:[#allocation3 + $0x30] sm:$0xff] }
 0x201   : > { %420 = vst.msk [vmem:[%s961_s26 + $0x28] sm:$0xff] %vm158_vm0, %v412_v44  ;;  %421 = vst.msk [vmem:[%s961_s26 + $0x30] sm:$0xff] %vm158_vm0, %v413_v42 }
 0x203   : > { %v414_v43 = vld [vmem:[#allocation3 + $0x38] sm:$0xff] }
 0x204   : > { %422 = vst.msk [vmem:[%s961_s26 + $0x38] sm:$0xff] %vm158_vm0, %v414_v43 }
 0x205 PF: > { %s14_s11 = sadd.s32 1, %s654_s11   ;;  %s1023_s6 = smov %s638_s7 }
 0x206   : > { %p11_p9 = scmp.ge.s32.totalorder %s14_s11, 4   ;;  %s1024_s7 = smov %s642_s8 }
 0x207   : > { %s1025_s8 = smov %s720_s18  ;;  %s1026_s9 = smov %s650_s10 }
 0x208   : > { %s1027_s10 = smov %s1029_s13  ;;  %13 = sbr.rel (!%p11_p9) target bundleno = 4 (0x4), region = 72 }
 0x20f   :  { %445 = vsyncpa [#allocation5], 1 }
 0x210   :  { %447 = vsyncpa [#allocation5 + $0x1], 1 }

</bundles_post_ra>
